<compile_context>
chip_gen: v5e
topology: v5e:2x2
jax: 0.10.0
libtpu: 0.0.40
codegen_flags: <defaults>
</compile_context>

<pallas_src>
import jax
import jax.numpy as jnp
from jax.experimental import pallas as pl
from jax.experimental.pallas import tpu as pltpu

C_IN = 9
C_OUT = 3
LANES = 128
SUB = 64          # inner chunk: 64 sublane rows x 128 lanes per channel


def _conv1x1_kernel(x_ref, w_ref, b_ref, o_ref):
    # x_ref: (C_IN, tp, 128) VMEM    w_ref: (C_OUT, C_IN) SMEM f32
    # b_ref: (C_OUT,)        SMEM    o_ref: (C_OUT, tp, 128) VMEM
    tp = x_ref.shape[1]                       # static block shape

    # Hoist the 27 weight + 3 bias SMEM scalar reads out of the chunk loop
    # (JAX does not CSE them across iterations).  Keep them scalar.
    w = [[w_ref[co, ci] for ci in range(C_IN)] for co in range(C_OUT)]
    b = [b_ref[co] for co in range(C_OUT)]

    def chunk(row, rows):
        accs = [None] * C_OUT
        for ci in range(C_IN):
            xc = x_ref[ci, pl.ds(row, rows), :].astype(jnp.float32)
            for co in range(C_OUT):
                term = xc * w[co][ci]
                accs[co] = term if ci == 0 else accs[co] + term
        for co in range(C_OUT):
            o_ref[co, pl.ds(row, rows), :] = (accs[co] + b[co]).astype(o_ref.dtype)

    n_full = tp // SUB
    rem = tp - n_full * SUB                   # non-zero only when tp = P < 64

    if n_full > 0:
        def body(j, carry):
            chunk(pl.multiple_of(j * SUB, SUB), SUB)
            return carry
        jax.lax.fori_loop(0, n_full, body, 0, unroll=True)
    if rem > 0:
        chunk(n_full * SUB, rem)              # static tail chunk (tiny images)


def channel_reduction_forward(x_nchw, weight_oihw, bias, *, tile_rows=512):
    """Forward pass matching nn.Conv2d(9, 3, kernel_size=1).

    x_nchw:      (N, 9, H, W) float32
    weight_oihw: (3, 9, 1, 1) float32  (PyTorch conv weight layout)
    bias:        (3,)          float32
    returns:     (N, 3, H, W) float32
    """
    N, C, H, W = x_nchw.shape
    assert C == C_IN
    HW = H * W

    # Pixels live in a lane-dense (P, 128) sublane x lane grid.
    P = pl.cdiv(HW, LANES)
    HW_pad = P * LANES

    if P >= SUB:
        tp = min(tile_rows, (P // SUB) * SUB)          # multiple of 64, <= P
        # v7x megacore: avoid a single-step grid when there is enough work.
        if N * pl.cdiv(P, tp) < 2 and P >= 2 * SUB:
            tp = (((P + 1) // 2) + SUB - 1) // SUB * SUB
    else:
        tp = P                                         # full-dim block (tiny image)

    x_flat = x_nchw.reshape(N, C_IN, HW)               # free reshape (no transpose)
    if HW_pad != HW:
        # Only the <128-element lane tail is padded; no pad when HW % 128 == 0.
        x_flat = jnp.pad(x_flat, ((0, 0), (0, 0), (0, HW_pad - HW)))
    x4 = x_flat.reshape(N, C_IN, P, LANES)

    w_mat = weight_oihw.reshape(C_OUT, C_IN).astype(jnp.float32)   # W[co, ci]
    b_vec = bias.reshape(C_OUT).astype(jnp.float32)

    out4 = pl.pallas_call(
        _conv1x1_kernel,
        out_shape=jax.ShapeDtypeStruct((N, C_OUT, P, LANES), x_nchw.dtype),
        grid=(N, pl.cdiv(P, tp)),                      # ragged last pixel tile OK
        in_specs=[
            pl.BlockSpec((None, C_IN, tp, LANES), lambda n, t: (n, 0, t, 0)),
            pl.BlockSpec(memory_space=pltpu.MemorySpace.SMEM),   # weights (3, 9)
            pl.BlockSpec(memory_space=pltpu.MemorySpace.SMEM),   # bias (3,)
        ],
        out_specs=pl.BlockSpec((None, C_OUT, tp, LANES), lambda n, t: (n, 0, t, 0)),
        compiler_params=pltpu.CompilerParams(
            dimension_semantics=("parallel", "parallel"),
        ),
    )(x4, w_mat, b_vec)

    out_flat = out4.reshape(N, C_OUT, HW_pad)
    if HW_pad != HW:
        out_flat = out_flat[:, :, :HW]
    return out_flat.reshape(N, C_OUT, H, W)


def init_params(key):
    """Deterministic init matching PyTorch Conv2d default (kaiming-uniform-ish)."""
    kw, kb = jax.random.split(key)
    fan_in = C_IN * 1 * 1
    bound = 1.0 / (fan_in ** 0.5)
    weight = jax.random.uniform(
        kw, (C_OUT, C_IN, 1, 1), jnp.float32, minval=-bound, maxval=bound
    )
    bias = jax.random.uniform(
        kb, (C_OUT,), jnp.float32, minval=-bound, maxval=bound
    )
    return weight, bias


def _reference(x, weight, bias):
    return (
        jnp.einsum("nchw,oc->nohw", x, weight.reshape(C_OUT, C_IN))
        + bias[None, :, None, None]
    )


if __name__ == "__main__":
    key = jax.random.PRNGKey(0)
    kp, k1, k2, k3 = jax.random.split(key, 4)
    weight, bias = init_params(kp)

    # Case 1: 128-aligned pixel count (16*16 = 256 -> P = 2); no host padding.
    x1 = jax.random.normal(k1, (2, C_IN, 16, 16), jnp.float32)
    out1 = jax.block_until_ready(channel_reduction_forward(x1, weight, bias))
    ref1 = _reference(x1, weight, bias)
    assert out1.shape == (2, C_OUT, 16, 16)
    assert jnp.allclose(out1, ref1, atol=1e-5, rtol=1e-5)

    # Case 2: ragged lane tail (10*10 = 100 pixels -> pad only to 128).
    x2 = jax.random.normal(k2, (1, C_IN, 10, 10), jnp.float32)
    out2 = jax.block_until_ready(channel_reduction_forward(x2, weight, bias))
    ref2 = _reference(x2, weight, bias)
    assert out2.shape == (1, C_OUT, 10, 10)
    assert jnp.allclose(out2, ref2, atol=1e-5, rtol=1e-5)

    # Case 3: ragged pixel-tile grid (96*96 -> P = 72, tp = 64, 2 tiles, no pad).
    x3 = jax.random.normal(k3, (1, C_IN, 96, 96), jnp.float32)
    out3 = jax.block_until_ready(channel_reduction_forward(x3, weight, bias))
    ref3 = _reference(x3, weight, bias)
    assert out3.shape == (1, C_OUT, 96, 96)
    assert jnp.allclose(out3, ref3, atol=1e-5, rtol=1e-5)

    print("KERNEL_OK")
</pallas_src>

<mosaic_0001>
module attributes {stable_mosaic.version = 11 : i64} {
  func.func @_conv1x1_kernel(%arg0: i32, %arg1: i32, %arg2: memref<1x9x2x128xf32, #tpu.memory_space<vmem>>, %arg3: memref<3x9xf32, #tpu.memory_space<smem>>, %arg4: memref<3xf32, #tpu.memory_space<smem>>, %arg5: memref<1x3x2x128xf32, #tpu.memory_space<vmem>>) attributes {dimension_semantics = [#tpu.dimension_semantics<parallel>, #tpu.dimension_semantics<parallel>], iteration_bounds = array<i64: 2, 1>, scalar_prefetch = 0 : i64, scratch_operands = 0 : i64, tpu.core_type = #tpu.core_type<tc>, window_params = [{transform_indices = @transform_0, window_bounds = array<i64: 1, 9, 2, 128>}, {transform_indices = @transform_1, window_bounds = array<i64: 3, 9>}, {transform_indices = @transform_2, window_bounds = array<i64: 3>}, {transform_indices = @transform_3, window_bounds = array<i64: 1, 3, 2, 128>}]} {
    %c0 = arith.constant 0 : index
    %c0_0 = arith.constant 0 : index
    %0 = memref.load %arg3[%c0, %c0_0] : memref<3x9xf32, #tpu.memory_space<smem>>
    %c0_1 = arith.constant 0 : index
    %c1 = arith.constant 1 : index
    %1 = memref.load %arg3[%c0_1, %c1] : memref<3x9xf32, #tpu.memory_space<smem>>
    %c0_2 = arith.constant 0 : index
    %c2 = arith.constant 2 : index
    %2 = memref.load %arg3[%c0_2, %c2] : memref<3x9xf32, #tpu.memory_space<smem>>
    %c0_3 = arith.constant 0 : index
    %c3 = arith.constant 3 : index
    %3 = memref.load %arg3[%c0_3, %c3] : memref<3x9xf32, #tpu.memory_space<smem>>
    %c0_4 = arith.constant 0 : index
    %c4 = arith.constant 4 : index
    %4 = memref.load %arg3[%c0_4, %c4] : memref<3x9xf32, #tpu.memory_space<smem>>
    %c0_5 = arith.constant 0 : index
    %c5 = arith.constant 5 : index
    %5 = memref.load %arg3[%c0_5, %c5] : memref<3x9xf32, #tpu.memory_space<smem>>
    %c0_6 = arith.constant 0 : index
    %c6 = arith.constant 6 : index
    %6 = memref.load %arg3[%c0_6, %c6] : memref<3x9xf32, #tpu.memory_space<smem>>
    %c0_7 = arith.constant 0 : index
    %c7 = arith.constant 7 : index
    %7 = memref.load %arg3[%c0_7, %c7] : memref<3x9xf32, #tpu.memory_space<smem>>
    %c0_8 = arith.constant 0 : index
    %c8 = arith.constant 8 : index
    %8 = memref.load %arg3[%c0_8, %c8] : memref<3x9xf32, #tpu.memory_space<smem>>
    %c1_9 = arith.constant 1 : index
    %c0_10 = arith.constant 0 : index
    %9 = memref.load %arg3[%c1_9, %c0_10] : memref<3x9xf32, #tpu.memory_space<smem>>
    %c1_11 = arith.constant 1 : index
    %c1_12 = arith.constant 1 : index
    %10 = memref.load %arg3[%c1_11, %c1_12] : memref<3x9xf32, #tpu.memory_space<smem>>
    %c1_13 = arith.constant 1 : index
    %c2_14 = arith.constant 2 : index
    %11 = memref.load %arg3[%c1_13, %c2_14] : memref<3x9xf32, #tpu.memory_space<smem>>
    %c1_15 = arith.constant 1 : index
    %c3_16 = arith.constant 3 : index
    %12 = memref.load %arg3[%c1_15, %c3_16] : memref<3x9xf32, #tpu.memory_space<smem>>
    %c1_17 = arith.constant 1 : index
    %c4_18 = arith.constant 4 : index
    %13 = memref.load %arg3[%c1_17, %c4_18] : memref<3x9xf32, #tpu.memory_space<smem>>
    %c1_19 = arith.constant 1 : index
    %c5_20 = arith.constant 5 : index
    %14 = memref.load %arg3[%c1_19, %c5_20] : memref<3x9xf32, #tpu.memory_space<smem>>
    %c1_21 = arith.constant 1 : index
    %c6_22 = arith.constant 6 : index
    %15 = memref.load %arg3[%c1_21, %c6_22] : memref<3x9xf32, #tpu.memory_space<smem>>
    %c1_23 = arith.constant 1 : index
    %c7_24 = arith.constant 7 : index
    %16 = memref.load %arg3[%c1_23, %c7_24] : memref<3x9xf32, #tpu.memory_space<smem>>
    %c1_25 = arith.constant 1 : index
    %c8_26 = arith.constant 8 : index
    %17 = memref.load %arg3[%c1_25, %c8_26] : memref<3x9xf32, #tpu.memory_space<smem>>
    %c2_27 = arith.constant 2 : index
    %c0_28 = arith.constant 0 : index
    %18 = memref.load %arg3[%c2_27, %c0_28] : memref<3x9xf32, #tpu.memory_space<smem>>
    %c2_29 = arith.constant 2 : index
    %c1_30 = arith.constant 1 : index
    %19 = memref.load %arg3[%c2_29, %c1_30] : memref<3x9xf32, #tpu.memory_space<smem>>
    %c2_31 = arith.constant 2 : index
    %c2_32 = arith.constant 2 : index
    %20 = memref.load %arg3[%c2_31, %c2_32] : memref<3x9xf32, #tpu.memory_space<smem>>
    %c2_33 = arith.constant 2 : index
    %c3_34 = arith.constant 3 : index
    %21 = memref.load %arg3[%c2_33, %c3_34] : memref<3x9xf32, #tpu.memory_space<smem>>
    %c2_35 = arith.constant 2 : index
    %c4_36 = arith.constant 4 : index
    %22 = memref.load %arg3[%c2_35, %c4_36] : memref<3x9xf32, #tpu.memory_space<smem>>
    %c2_37 = arith.constant 2 : index
    %c5_38 = arith.constant 5 : index
    %23 = memref.load %arg3[%c2_37, %c5_38] : memref<3x9xf32, #tpu.memory_space<smem>>
    %c2_39 = arith.constant 2 : index
    %c6_40 = arith.constant 6 : index
    %24 = memref.load %arg3[%c2_39, %c6_40] : memref<3x9xf32, #tpu.memory_space<smem>>
    %c2_41 = arith.constant 2 : index
    %c7_42 = arith.constant 7 : index
    %25 = memref.load %arg3[%c2_41, %c7_42] : memref<3x9xf32, #tpu.memory_space<smem>>
    %c2_43 = arith.constant 2 : index
    %c8_44 = arith.constant 8 : index
    %26 = memref.load %arg3[%c2_43, %c8_44] : memref<3x9xf32, #tpu.memory_space<smem>>
    %c0_45 = arith.constant 0 : index
    %27 = memref.load %arg4[%c0_45] : memref<3xf32, #tpu.memory_space<smem>>
    %c1_46 = arith.constant 1 : index
    %28 = memref.load %arg4[%c1_46] : memref<3xf32, #tpu.memory_space<smem>>
    %c2_47 = arith.constant 2 : index
    %29 = memref.load %arg4[%c2_47] : memref<3xf32, #tpu.memory_space<smem>>
    %c0_48 = arith.constant 0 : index
    %c0_49 = arith.constant 0 : index
    %c0_50 = arith.constant 0 : index
    %c0_51 = arith.constant 0 : index
    %30 = vector.load %arg2[%c0_48, %c0_49, %c0_50, %c0_51] : memref<1x9x2x128xf32, #tpu.memory_space<vmem>>, vector<1x1x2x128xf32>
    %31 = vector.shape_cast %30 : vector<1x1x2x128xf32> to vector<2x128xf32>
    %32 = vector.broadcast %0 : f32 to vector<2x128xf32>
    %33 = arith.mulf %31, %32 : vector<2x128xf32>
    %34 = vector.broadcast %9 : f32 to vector<2x128xf32>
    %35 = arith.mulf %31, %34 : vector<2x128xf32>
    %36 = vector.broadcast %18 : f32 to vector<2x128xf32>
    %37 = arith.mulf %31, %36 : vector<2x128xf32>
    %c0_52 = arith.constant 0 : index
    %c1_53 = arith.constant 1 : index
    %c0_54 = arith.constant 0 : index
    %c0_55 = arith.constant 0 : index
    %38 = vector.load %arg2[%c0_52, %c1_53, %c0_54, %c0_55] : memref<1x9x2x128xf32, #tpu.memory_space<vmem>>, vector<1x1x2x128xf32>
    %39 = vector.shape_cast %38 : vector<1x1x2x128xf32> to vector<2x128xf32>
    %40 = vector.broadcast %1 : f32 to vector<2x128xf32>
    %41 = arith.mulf %39, %40 : vector<2x128xf32>
    %42 = arith.addf %33, %41 : vector<2x128xf32>
    %43 = vector.broadcast %10 : f32 to vector<2x128xf32>
    %44 = arith.mulf %39, %43 : vector<2x128xf32>
    %45 = arith.addf %35, %44 : vector<2x128xf32>
    %46 = vector.broadcast %19 : f32 to vector<2x128xf32>
    %47 = arith.mulf %39, %46 : vector<2x128xf32>
    %48 = arith.addf %37, %47 : vector<2x128xf32>
    %c0_56 = arith.constant 0 : index
    %c2_57 = arith.constant 2 : index
    %c0_58 = arith.constant 0 : index
    %c0_59 = arith.constant 0 : index
    %49 = vector.load %arg2[%c0_56, %c2_57, %c0_58, %c0_59] : memref<1x9x2x128xf32, #tpu.memory_space<vmem>>, vector<1x1x2x128xf32>
    %50 = vector.shape_cast %49 : vector<1x1x2x128xf32> to vector<2x128xf32>
    %51 = vector.broadcast %2 : f32 to vector<2x128xf32>
    %52 = arith.mulf %50, %51 : vector<2x128xf32>
    %53 = arith.addf %42, %52 : vector<2x128xf32>
    %54 = vector.broadcast %11 : f32 to vector<2x128xf32>
    %55 = arith.mulf %50, %54 : vector<2x128xf32>
    %56 = arith.addf %45, %55 : vector<2x128xf32>
    %57 = vector.broadcast %20 : f32 to vector<2x128xf32>
    %58 = arith.mulf %50, %57 : vector<2x128xf32>
    %59 = arith.addf %48, %58 : vector<2x128xf32>
    %c0_60 = arith.constant 0 : index
    %c3_61 = arith.constant 3 : index
    %c0_62 = arith.constant 0 : index
    %c0_63 = arith.constant 0 : index
    %60 = vector.load %arg2[%c0_60, %c3_61, %c0_62, %c0_63] : memref<1x9x2x128xf32, #tpu.memory_space<vmem>>, vector<1x1x2x128xf32>
    %61 = vector.shape_cast %60 : vector<1x1x2x128xf32> to vector<2x128xf32>
    %62 = vector.broadcast %3 : f32 to vector<2x128xf32>
    %63 = arith.mulf %61, %62 : vector<2x128xf32>
    %64 = arith.addf %53, %63 : vector<2x128xf32>
    %65 = vector.broadcast %12 : f32 to vector<2x128xf32>
    %66 = arith.mulf %61, %65 : vector<2x128xf32>
    %67 = arith.addf %56, %66 : vector<2x128xf32>
    %68 = vector.broadcast %21 : f32 to vector<2x128xf32>
    %69 = arith.mulf %61, %68 : vector<2x128xf32>
    %70 = arith.addf %59, %69 : vector<2x128xf32>
    %c0_64 = arith.constant 0 : index
    %c4_65 = arith.constant 4 : index
    %c0_66 = arith.constant 0 : index
    %c0_67 = arith.constant 0 : index
    %71 = vector.load %arg2[%c0_64, %c4_65, %c0_66, %c0_67] : memref<1x9x2x128xf32, #tpu.memory_space<vmem>>, vector<1x1x2x128xf32>
    %72 = vector.shape_cast %71 : vector<1x1x2x128xf32> to vector<2x128xf32>
    %73 = vector.broadcast %4 : f32 to vector<2x128xf32>
    %74 = arith.mulf %72, %73 : vector<2x128xf32>
    %75 = arith.addf %64, %74 : vector<2x128xf32>
    %76 = vector.broadcast %13 : f32 to vector<2x128xf32>
    %77 = arith.mulf %72, %76 : vector<2x128xf32>
    %78 = arith.addf %67, %77 : vector<2x128xf32>
    %79 = vector.broadcast %22 : f32 to vector<2x128xf32>
    %80 = arith.mulf %72, %79 : vector<2x128xf32>
    %81 = arith.addf %70, %80 : vector<2x128xf32>
    %c0_68 = arith.constant 0 : index
    %c5_69 = arith.constant 5 : index
    %c0_70 = arith.constant 0 : index
    %c0_71 = arith.constant 0 : index
    %82 = vector.load %arg2[%c0_68, %c5_69, %c0_70, %c0_71] : memref<1x9x2x128xf32, #tpu.memory_space<vmem>>, vector<1x1x2x128xf32>
    %83 = vector.shape_cast %82 : vector<1x1x2x128xf32> to vector<2x128xf32>
    %84 = vector.broadcast %5 : f32 to vector<2x128xf32>
    %85 = arith.mulf %83, %84 : vector<2x128xf32>
    %86 = arith.addf %75, %85 : vector<2x128xf32>
    %87 = vector.broadcast %14 : f32 to vector<2x128xf32>
    %88 = arith.mulf %83, %87 : vector<2x128xf32>
    %89 = arith.addf %78, %88 : vector<2x128xf32>
    %90 = vector.broadcast %23 : f32 to vector<2x128xf32>
    %91 = arith.mulf %83, %90 : vector<2x128xf32>
    %92 = arith.addf %81, %91 : vector<2x128xf32>
    %c0_72 = arith.constant 0 : index
    %c6_73 = arith.constant 6 : index
    %c0_74 = arith.constant 0 : index
    %c0_75 = arith.constant 0 : index
    %93 = vector.load %arg2[%c0_72, %c6_73, %c0_74, %c0_75] : memref<1x9x2x128xf32, #tpu.memory_space<vmem>>, vector<1x1x2x128xf32>
    %94 = vector.shape_cast %93 : vector<1x1x2x128xf32> to vector<2x128xf32>
    %95 = vector.broadcast %6 : f32 to vector<2x128xf32>
    %96 = arith.mulf %94, %95 : vector<2x128xf32>
    %97 = arith.addf %86, %96 : vector<2x128xf32>
    %98 = vector.broadcast %15 : f32 to vector<2x128xf32>
    %99 = arith.mulf %94, %98 : vector<2x128xf32>
    %100 = arith.addf %89, %99 : vector<2x128xf32>
    %101 = vector.broadcast %24 : f32 to vector<2x128xf32>
    %102 = arith.mulf %94, %101 : vector<2x128xf32>
    %103 = arith.addf %92, %102 : vector<2x128xf32>
    %c0_76 = arith.constant 0 : index
    %c7_77 = arith.constant 7 : index
    %c0_78 = arith.constant 0 : index
    %c0_79 = arith.constant 0 : index
    %104 = vector.load %arg2[%c0_76, %c7_77, %c0_78, %c0_79] : memref<1x9x2x128xf32, #tpu.memory_space<vmem>>, vector<1x1x2x128xf32>
    %105 = vector.shape_cast %104 : vector<1x1x2x128xf32> to vector<2x128xf32>
    %106 = vector.broadcast %7 : f32 to vector<2x128xf32>
    %107 = arith.mulf %105, %106 : vector<2x128xf32>
    %108 = arith.addf %97, %107 : vector<2x128xf32>
    %109 = vector.broadcast %16 : f32 to vector<2x128xf32>
    %110 = arith.mulf %105, %109 : vector<2x128xf32>
    %111 = arith.addf %100, %110 : vector<2x128xf32>
    %112 = vector.broadcast %25 : f32 to vector<2x128xf32>
    %113 = arith.mulf %105, %112 : vector<2x128xf32>
    %114 = arith.addf %103, %113 : vector<2x128xf32>
    %c0_80 = arith.constant 0 : index
    %c8_81 = arith.constant 8 : index
    %c0_82 = arith.constant 0 : index
    %c0_83 = arith.constant 0 : index
    %115 = vector.load %arg2[%c0_80, %c8_81, %c0_82, %c0_83] : memref<1x9x2x128xf32, #tpu.memory_space<vmem>>, vector<1x1x2x128xf32>
    %116 = vector.shape_cast %115 : vector<1x1x2x128xf32> to vector<2x128xf32>
    %117 = vector.broadcast %8 : f32 to vector<2x128xf32>
    %118 = arith.mulf %116, %117 : vector<2x128xf32>
    %119 = arith.addf %108, %118 : vector<2x128xf32>
    %120 = vector.broadcast %17 : f32 to vector<2x128xf32>
    %121 = arith.mulf %116, %120 : vector<2x128xf32>
    %122 = arith.addf %111, %121 : vector<2x128xf32>
    %123 = vector.broadcast %26 : f32 to vector<2x128xf32>
    %124 = arith.mulf %116, %123 : vector<2x128xf32>
    %125 = arith.addf %114, %124 : vector<2x128xf32>
    %126 = vector.broadcast %27 : f32 to vector<2x128xf32>
    %127 = arith.addf %119, %126 : vector<2x128xf32>
    %c0_84 = arith.constant 0 : index
    %c0_85 = arith.constant 0 : index
    %c0_86 = arith.constant 0 : index
    %c0_87 = arith.constant 0 : index
    %128 = vector.load %arg5[%c0_84, %c0_85, %c0_86, %c0_87] : memref<1x3x2x128xf32, #tpu.memory_space<vmem>>, vector<1x1x2x128xf32>
    %129 = vector.shape_cast %128 : vector<1x1x2x128xf32> to vector<2x128xf32>
    %130 = vector.shape_cast %127 : vector<2x128xf32> to vector<1x1x2x128xf32>
    tpu.vector_store %arg5[%c0_84, %c0_85, %c0_86, %c0_87], %130 {strides = array<i32>} : memref<1x3x2x128xf32, #tpu.memory_space<vmem>>, vector<1x1x2x128xf32>,
    %131 = vector.broadcast %28 : f32 to vector<2x128xf32>
    %132 = arith.addf %122, %131 : vector<2x128xf32>
    %c0_88 = arith.constant 0 : index
    %c1_89 = arith.constant 1 : index
    %c0_90 = arith.constant 0 : index
    %c0_91 = arith.constant 0 : index
    %133 = vector.load %arg5[%c0_88, %c1_89, %c0_90, %c0_91] : memref<1x3x2x128xf32, #tpu.memory_space<vmem>>, vector<1x1x2x128xf32>
    %134 = vector.shape_cast %133 : vector<1x1x2x128xf32> to vector<2x128xf32>
    %135 = vector.shape_cast %132 : vector<2x128xf32> to vector<1x1x2x128xf32>
    tpu.vector_store %arg5[%c0_88, %c1_89, %c0_90, %c0_91], %135 {strides = array<i32>} : memref<1x3x2x128xf32, #tpu.memory_space<vmem>>, vector<1x1x2x128xf32>,
    %136 = vector.broadcast %29 : f32 to vector<2x128xf32>
    %137 = arith.addf %125, %136 : vector<2x128xf32>
    %c0_92 = arith.constant 0 : index
    %c2_93 = arith.constant 2 : index
    %c0_94 = arith.constant 0 : index
    %c0_95 = arith.constant 0 : index
    %138 = vector.load %arg5[%c0_92, %c2_93, %c0_94, %c0_95] : memref<1x3x2x128xf32, #tpu.memory_space<vmem>>, vector<1x1x2x128xf32>
    %139 = vector.shape_cast %138 : vector<1x1x2x128xf32> to vector<2x128xf32>
    %140 = vector.shape_cast %137 : vector<2x128xf32> to vector<1x1x2x128xf32>
    tpu.vector_store %arg5[%c0_92, %c2_93, %c0_94, %c0_95], %140 {strides = array<i32>} : memref<1x3x2x128xf32, #tpu.memory_space<vmem>>, vector<1x1x2x128xf32>,
    return
  }
  func.func @transform_0(%arg0: i32, %arg1: i32) -> (i32, i32, i32, i32) {
    %c0_i32 = arith.constant 0 : i32
    %c0_i32_0 = arith.constant 0 : i32
    %c0_i32_1 = arith.constant 0 : i32
    return %arg0, %c0_i32, %arg1, %c0_i32_0 : i32, i32, i32, i32
  }
  func.func @transform_1(%arg0: i32, %arg1: i32) -> (i32, i32) {
    %c0_i32 = arith.constant 0 : i32
    %c0_i32_0 = arith.constant 0 : i32
    %c0_i32_1 = arith.constant 0 : i32
    return %c0_i32, %c0_i32_0 : i32, i32
  }
  func.func @transform_2(%arg0: i32, %arg1: i32) -> i32 {
    %c0_i32 = arith.constant 0 : i32
    %c0_i32_0 = arith.constant 0 : i32
    return %c0_i32 : i32
  }
  func.func @transform_3(%arg0: i32, %arg1: i32) -> (i32, i32, i32, i32) {
    %c0_i32 = arith.constant 0 : i32
    %c0_i32_0 = arith.constant 0 : i32
    %c0_i32_1 = arith.constant 0 : i32
    return %arg0, %c0_i32, %arg1, %c0_i32_0 : i32, i32, i32, i32
  }
}

</mosaic_0001>

<bundles_post_ra>
// kernel: tpu_custom_call.1
= control target key start
LH: loop header
LB: loop body
LE: loop exit
PB: predicated region body
PF: predicated region fallthrough
CT: control target
= control target key end

     0   :  { %s1078_s0 = inlined_call_operand.hbm [shape: f32[2,9,2,128], index: 0, kind: input, shape index: {}]   ;;  %s1079_s1 = inlined_call_operand.hbm [shape: f32[3,9], index: 1, kind: input, shape index: {}]   ;;  %s1080_s2 = inlined_call_operand.vmem [shape: f32[3], index: 2, kind: input, shape index: {}]   ;;  %s1081_s3 = inlined_call_operand.hbm [shape: f32[2,3,2,128], index: 3, kind: output, shape index: {}]  }
   0x1   :  { %1082 = sst [smem:[#allocation14_spill]] %s1079_s1 }
   0x2   :  { %8 = vsyncpa [#allocation3], 0 }
   0x3   :  { %10 = vsyncpa [#allocation3 + $0x1], 0 }
   0x4   :  { %11 = vsyncpa [#allocation5], 0 }
   0x5   :  { %12 = vsyncpa [#allocation6], 0 }
   0x6   :  { %13 = vsyncpa [#allocation4], 0 }
   0x7   :  { %15 = vsyncpa [#allocation4 + $0x1], 0  ;;  %s818_s12 = smov 0   ;;  %s820_s13 = smov 0  }
   0x8   :  { %s822_s14 = smov 0   ;;  %s824_s15 = smov 0  }
   0x9   :  { %s826_s16 = smov 0   ;;  %s828_s17 = smov 0  }
   0xa LB: > { %s497_s18 = sadd.s32 4294967295, %s790_s17   ;;  %s498_s19 = sadd.s32 4294967294, %s790_s17   ;;  %s790_s17 = sphi %s828_s17, %s21_s17   ;;  %s786_s16 = sphi %s826_s16, %s1095_s16   ;;  %s782_s15 = sphi %s824_s15, %s1094_s15   ;;  %s778_s14 = sphi %s822_s14, %s1093_s14   ;;  %s774_s13 = sphi %s820_s13, %s1092_s13   ;;  %s770_s12 = sphi %s818_s12, %s1091_s12  }
   0xb   : > { %s42_s20 = sadd.s32 1, %s778_s14  ;;  %p49_p0 = scmp.ne.s32.totalorder %s778_s14, %s774_s13 }
   0xc   : > { %p50_p1 = scmp.eq.s32.totalorder %s790_s17, 0  ;;  %p55_p2 = scmp.ne.s32.totalorder %s774_s13, %s770_s12 }
   0xd   : > { %p856_p3 = scmp.eq.s32.totalorder %s497_s18, 0  ;;  %p123_p4 = scmp.eq.s32.totalorder %s497_s18, 1 }
   0xe   : > { %p860_p5 = por %p50_p1, %p49_p0  ;;  %p129_p6 = scmp.eq.s32.totalorder %s498_s19, 1 }
   0xf   : > { %p866_p7 = por %p856_p3, %p55_p2  ;;  %p870_p8 = por %p123_p4, %p49_p0 }
  0x10   : > { %p874_p9 = por %p129_p6, %p55_p2  ;;  %p499_p10 = scmp.ge.s32.totalorder %s790_s17, 1 }
  0x11   : > { %p136_p11 = scmp.lt.s32.totalorder %s790_s17, 3  ;;  %s1088_s1 = sld [smem:[#allocation14_spill]] }
  0x12   : > { %p502_p13 = scmp.ge.s32.totalorder %s790_s17, 2  ;;  %p582_p0 = scmp.lt.s32.totalorder %s790_s17, 2 }
  0x13   : > { %p883_p12 = pnand %p499_p10, %p136_p11  ;;  %s158_s5 = sshll.u32 %s1080_s2, 4  ;;  %s159_s5 = int_to_ptr.vmem [resolvable:$true] %s158_s5 }
  0x14   : > { %p896_p2 = pnand %p582_p0, %p860_p5  ;;  %s792_s7 = smov [#allocation7]  }
  0x15   : > { %p565_p1 = pneg %p883_p12  ;;  %s793_s8 = smov [#allocation8]  }
  0x16   : > { %s33_s9 = sadd.s32 1, %s786_s16  ;;  %s169_s10 = sand.u32 1, %s778_s14  }
  0x17   : > { %s148_s28 = sshll.u32 %s1088_s1, 4  ;;  %p566_p4 = pnand %p565_p1, %p856_p3  ;;  %s149_s28 = int_to_ptr.hbm [resolvable:$true] %s148_s28 }
  0x18   : > { %p35_p6 = scmp.ge.s32.totalorder %s33_s9, 2  ;;  %s548_s11 = smul.u32 18, %s169_s10 }
  0x19   : > { %568 = dma.hbm_to_smem (!%p566_p4), %s149_s28, 64, %s792_s7, [#allocation5]  }
  0x1a   : > { %571 = dma.vmem_to_smem (!%p566_p4), %s159_s5, 16, %s793_s8, [#allocation6]  }
  0x1b   : > { %s1097_s9 = smov (%p35_p6, %s33_s9), 0  ;;  %s549_s18 = smul.u32 18, %s786_s16 }
  0x1c   : > { %s37_s19 = ssub.s32 %s786_s16, %s1097_s9  ;;  %s173_s22 = scalar_lea.vmem [#allocation2], %s548_s11 }
  0x1d   : > { %s182_s26 = sshll.u32 %s173_s22, 4  ;;  %p40_p5 = scmp.eq.s32.totalorder %s37_s19, 0  ;;  %s183_s26 = int_to_ptr.vmem [resolvable:$true] %s182_s26 }
  0x1e   : > { %s179_s28 = scalar_lea.hbm %s1078_s0, %s549_s18  ;;  %s170_s7 = scalar_lea.sflag [#allocation3], %s169_s10 }
  0x1f   : > { %s180_s4 = sshll.u32 %s179_s28, 4  ;;  %s794_s8 = smov 32   ;;  %s181_s4 = int_to_ptr.hbm [resolvable:$true] %s180_s4 }
  0x20   : > { %s915_s5 = scalar_select %p40_p5, %s778_s14, %s42_s20  }
  0x21   : > { %s795_s1 = smov 2   ;;  %194 = sbr.rel (%p883_p12) target bundleno = 98 (0x62), region = 32 }
  0x22   : > { %575 = dma.hbm_to_vmem [thread:$0]  (!%p896_p2), %s181_s4, 288, %s183_s26, %s170_s7, %s794_s8, %s794_s8, %s795_s1  }
  0x23   : > { %s922_s11 = sand.u32 (!%p883_p12), 1, %s774_s13  }
  0x24   : > { %s550_s18 = smul.u32 (!%p883_p12), 18, %s922_s11  ;;  %s197_s19 = scalar_lea.sflag (!%p883_p12), [#allocation3], %s922_s11 }
  0x26   : > { %s926_s22 = scalar_lea.vmem [#allocation2], %s550_s18 }
  0x27   : > { %753 = dma.done.wait (%p866_p7), %s197_s19, 288  }
  0x28   : > { %755 = vsyncadd (%p866_p7), %s197_s19, 4294967008 }
  0x29   : > { %757 = dma.done.wait (%p856_p3), [#allocation5], 64  }
  0x2a   : > { %759 = vsyncadd (%p856_p3), [#allocation5], 4294967232 }
  0x2b   : > { %761 = dma.done.wait (%p856_p3), [#allocation6], 16  }
  0x2c   : > { %763 = vsyncadd (%p856_p3), [#allocation6], 4294967280 }
  0x2d   : > { %216 = sfence }
  0x2e   : > { %s235_s1 = sld [smem:[#allocation7]]  ;;  %v941_v0 = vld [vmem:[%s926_s22] sm:$0x3]  ;;  %v944_v1 = vld [vmem:[%s926_s22 + $0x2] sm:$0x3] }
  0x2f   : > { %s507_s20 = sld [smem:[#allocation7 + $0x1]]  ;;  %v949_v3 = vld [vmem:[%s926_s22 + $0x4] sm:$0x3]  ;;  %v955_v6 = vld [vmem:[%s926_s22 + $0x6] sm:$0x3] }
  0x30   : > { %s508_s23 = sld [smem:[#allocation7 + $0x2]]  ;;  %v964_v11 = vld [vmem:[%s926_s22 + $0x8] sm:$0x3]  ;;  %v968_v15 = vld [vmem:[%s926_s22 + $0xa] sm:$0x3] }
  0x31   : > { %s509_s29 = sld [smem:[#allocation7 + $0x3]]  ;;  %v972_v19 = vld [vmem:[%s926_s22 + $0xc] sm:$0x3]  ;;  %v979_v23 = vld [vmem:[%s926_s22 + $0xe] sm:$0x3] }
  0x32   : > { %s510_s6 = sld [smem:[#allocation7 + $0x4]]  ;;  %v986_v27 = vld [vmem:[%s926_s22 + $0x10] sm:$0x3] }
  0x33   : > { %s511_s10 = sld [smem:[#allocation7 + $0x5]] }
  0x34   : > { %s946_s26 = sld [smem:[#allocation7 + $0x6]]  ;;  %v266_v2 = vstv %s235_s1 }
  0x35   : > { %s951_s21 = sld [smem:[#allocation7 + $0x7]]  ;;  %v267_v4 = vmul.f32 %v266_v2, %v941_v0  ;;  %v274_v5 = vstv %s507_s20 }
  0x36   : > { %s957_s27 = sld [smem:[#allocation7 + $0x8]]  ;;  %v275_v7 = vmul.f32 %v944_v1, %v274_v5  ;;  %v285_v8 = vstv %s508_s23 }
  0x37   : > { %s960_s30 = sld [smem:[#allocation8]]  ;;  %v286_v9 = vmul.f32 %v949_v3, %v285_v8  ;;  %v296_v10 = vstv %s509_s29 }
  0x38   : > { %v276_v12 = vadd.f32 %v275_v7, %v267_v4  ;;  %v297_v13 = vmul.f32 %v955_v6, %v296_v10  ;;  %v307_v14 = vstv %s510_s6  ;;  %s515_s28 = sld [smem:[#allocation7 + $0x80]]  ;;  %s551_s6 = smul.u32 6, %s922_s11 }
  0x39   : > { %v318_v16 = vstv %s511_s10  ;;  %s516_s4 = sld [smem:[#allocation7 + $0x81]]  ;;  %v308_v18 = vmul.f32 %v964_v11, %v307_v14 }
  0x3a   : > { %v287_v17 = vadd.f32 %v286_v9, %v276_v12  ;;  %s517_s7 = sld [smem:[#allocation7 + $0x82]]  ;;  %v329_v20 = vstv %s946_s26  ;;  %v319_v22 = vmul.f32 %v968_v15, %v318_v16 }
  0x3b   : > { %s518_s8 = sld [smem:[#allocation7 + $0x83]]  ;;  %v340_v24 = vstv %s951_s21  ;;  %v330_v26 = vmul.f32 %v972_v19, %v329_v20 }
  0x3c   : > { %v298_v21 = vadd.f32 %v297_v13, %v287_v17  ;;  %s976_s18 = sld [smem:[#allocation7 + $0x84]]  ;;  %v351_v28 = vstv %s957_s27  ;;  %v341_v33 = vmul.f32 %v979_v23, %v340_v24 }
  0x3d   : > { %s982_s19 = sld [smem:[#allocation7 + $0x85]]  ;;  %v352_v36 = vmul.f32 %v986_v27, %v351_v28  ;;  %v360_v48 = vstv %s960_s30  ;;  %s1020_s30 = scalar_lea.vmem [#allocation9], %s551_s6 }
  0x3e   : > { %v309_v25 = vadd.f32 %v308_v18, %v298_v21  ;;  %s989_s1 = sld [smem:[#allocation7 + $0x86]]  ;;  %v268_v29 = vstv %s515_s28 }
  0x3f   : > { %s991_s20 = sld [smem:[#allocation7 + $0x87]]  ;;  %v269_v30 = vmul.f32 %v268_v29, %v941_v0  ;;  %v277_v31 = vstv %s516_s4 }
  0x40   : > { %v320_v32 = vadd.f32 %v319_v22, %v309_v25  ;;  %s995_s23 = sld [smem:[#allocation7 + $0x88]]  ;;  %v278_v34 = vmul.f32 %v944_v1, %v277_v31  ;;  %v288_v35 = vstv %s517_s7 }
  0x41   : > { %s999_s22 = sld [smem:[#allocation8 + $0x1]]  ;;  %v289_v37 = vmul.f32 %v949_v3, %v288_v35  ;;  %v299_v38 = vstv %s518_s8 }
  0x42   : > { %v331_v39 = vadd.f32 %v330_v26, %v320_v32  ;;  %v279_v40 = vadd.f32 %v278_v34, %v269_v30  ;;  %v300_v41 = vmul.f32 %v955_v6, %v299_v38  ;;  %v310_v42 = vstv %s976_s18  ;;  %s524_s29 = sld [smem:[#allocation7 + $0x100]] }
  0x43   : > { %v321_v43 = vstv %s982_s19  ;;  %s525_s10 = sld [smem:[#allocation7 + $0x101]]  ;;  %v311_v46 = vmul.f32 %v964_v11, %v310_v42  ;;  %s552_s19 = smul.u32 6, %s782_s15 }
  0x44   : > { %v342_v44 = vadd.f32 %v341_v33, %v331_v39  ;;  %v290_v45 = vadd.f32 %v289_v37, %v279_v40  ;;  %v332_v47 = vstv %s989_s1  ;;  %s526_s26 = sld [smem:[#allocation7 + $0x102]]  ;;  %v322_v51 = vmul.f32 %v968_v15, %v321_v43  ;;  %s372_s15 = scalar_lea.sflag [#allocation4], %s922_s11 }
  0x45   : > { %s527_s21 = sld [smem:[#allocation7 + $0x103]]  ;;  %v333_v52 = vmul.f32 %v972_v19, %v332_v47  ;;  %v343_v53 = vstv %s991_s20 }
  0x46   : > { %v353_v49 = vadd.f32 %v352_v36, %v342_v44  ;;  %v301_v50 = vadd.f32 %v300_v41, %v290_v45  ;;  %s528_s27 = sld [smem:[#allocation7 + $0x104]]  ;;  %v354_v56 = vstv %s995_s23  ;;  %v344_v61 = vmul.f32 %v979_v23, %v343_v53  ;;  %s384_s23 = scalar_lea.hbm %s1081_s3, %s552_s19 }
  0x47   : > { %s1012_s28 = sld [smem:[#allocation7 + $0x105]]  ;;  %v355_v2 = vmul.f32 %v986_v27, %v354_v56  ;;  %v363_v14 = vstv %s999_s22  ;;  %s385_s22 = sshll.u32 %s1020_s30, 4  ;;  %s386_s22 = int_to_ptr.vmem [resolvable:$true] %s385_s22 }
  0x48   : > { %v361_v54 = vadd.f32 %v360_v48, %v353_v49  ;;  %v312_v55 = vadd.f32 %v311_v46, %v301_v50  ;;  %s1015_s4 = sld [smem:[#allocation7 + $0x106]]  ;;  %v270_v57 = vstv %s524_s29  ;;  %s387_s29 = sshll.u32 %s384_s23, 4  ;;  %s388_s29 = int_to_ptr.hbm [resolvable:$true] %s387_s29 }
  0x49   : > { %s1017_s7 = sld [smem:[#allocation7 + $0x107]]  ;;  %v271_v58 = vmul.f32 %v270_v57, %v941_v0  ;;  %v280_v59 = vstv %s525_s10  ;;  %s714_s6 = sshra.s32 %s388_s29, 4  ;;  %s715_s6 = int_to_ptr.hbm [resolvable:$true] %s714_s6 }
  0x4a   : > { %362 = vst [vmem:[%s1020_s30] sm:$0x3] %v361_v54  ;;  %v323_v60 = vadd.f32 %v322_v51, %v312_v55  ;;  %v281_v62 = vmul.f32 %v944_v1, %v280_v59  ;;  %v291_v63 = vstv %s526_s26  ;;  %s532_s8 = sld [smem:[#allocation7 + $0x108]]  ;;  %s716_s10 = scalar_lea.hbm %s715_s6, 6 }
  0x4b   : > { %v292_v4 = vmul.f32 %v949_v3, %v291_v63  ;;  %v302_v0 = vstv %s527_s21  ;;  %s534_s18 = sld [smem:[#allocation8 + $0x2]]  ;;  %p717_p3 = scmp.ne.s32.totalorder %s715_s6, %s716_s10 }
  0x4c   : > { %v334_v5 = vadd.f32 %v333_v52, %v323_v60  ;;  %v282_v7 = vadd.f32 %v281_v62, %v271_v58  ;;  %v303_v8 = vmul.f32 %v955_v6, %v302_v0  ;;  %v313_v9 = vstv %s528_s27  ;;  %s720_s27 = scalar_lea.hbm %s1081_s3, 12  ;;  %p721_p11 = scmp.lt.s32.totalorder %s715_s6, %s1081_s3 }
  0x4d   : > { %v324_v10 = vstv %s1012_s28  ;;  %v314_v1 = vmul.f32 %v964_v11, %v313_v9  ;;  %p718_p7 = pnand %p717_p3, %p870_p8  ;;  %p722_p12 = scmp.lt.s32.totalorder %s720_s27, %s716_s10 }
  0x4e   : > { %v345_v12 = vadd.f32 %v344_v61, %v334_v5  ;;  %v293_v13 = vadd.f32 %v292_v4, %v282_v7  ;;  %v335_v16 = vstv %s1015_s4  ;;  %v325_v3 = vmul.f32 %v968_v15, %v324_v10 }
  0x4f   : > { %v346_v20 = vstv %s1017_s7  ;;  %v336_v6 = vmul.f32 %v972_v19, %v335_v16  ;;  %p719_p10 = pneg %p718_p7  ;;  %p723_p0 = por %p722_p12, %p721_p11 }
  0x50   : > { %v356_v17 = vadd.f32 %v355_v2, %v345_v12  ;;  %v304_v18 = vadd.f32 %v303_v8, %v293_v13  ;;  %v357_v24 = vstv %s532_s8  ;;  %v347_v11 = vmul.f32 %v979_v23, %v346_v20 }
  0x51   : > { %v358_v28 = vmul.f32 %v986_v27, %v357_v24  ;;  %v367_v29 = vstv %s534_s18  ;;  %p724_p1 = pnand %p723_p0, %p719_p10 }
  0x52   : > { %v364_v21 = vadd.f32 %v363_v14, %v356_v17  ;;  %v315_v22 = vadd.f32 %v314_v1, %v304_v18 }
  0x54   : > { %543 = vst [vmem:[%s1020_s30 + $0x2] sm:$0x3] %v364_v21  ;;  %v326_v25 = vadd.f32 %v325_v3, %v315_v22 }
  0x56   : > { %v337_v26 = vadd.f32 %v336_v6, %v326_v25 }
  0x58   : > { %v348_v15 = vadd.f32 %v347_v11, %v337_v26 }
  0x5a   : > { %v359_v19 = vadd.f32 %v358_v28, %v348_v15 }
  0x5c   : > { %v368_v30 = vadd.f32 %v367_v29, %v359_v19 }
  0x5e   : > { %544 = vst [vmem:[%s1020_s30 + $0x4] sm:$0x3] %v368_v30 }
  0x5f   : > { %727 = shalt.err (!%p724_p1)
}
  0x60   : > { %s796_s11 = smov 32   ;;  %s797_s7 = smov 2  }
  0x61   : > { %563 = dma.vmem_to_hbm [thread:$0]  (%p870_p8), %s386_s22, 96, %s388_s29, %s372_s15, %s796_s11, %s796_s11, %s797_s7  }
  0x62 PF: > { %s402_s30 = sand.u32 1, %s770_s12   ;;  %p577_p2 = pnand %p502_p13, %p874_p9 }
  0x63   : > { %s403_s8 = scalar_lea.sflag [#allocation4], %s402_s30 }
  0x64   : > { %p578_p4 = pneg %p577_p2 }
  0x66   : > { %765 = dma.done.wait (%p578_p4), %s403_s8, 96  }
  0x67   : > { %767 = vsyncadd (%p578_p4), %s403_s8, 4294967200  ;;  %s21_s17 = sadd.s32 1, %s790_s17   ;;  %s1091_s12 = smov %s774_s13 }
  0x68   : > { %p18_p6 = scmp.ge.s32.totalorder %s21_s17, 4   ;;  %s1092_s13 = smov %s778_s14 }
  0x69   : > { %s1093_s14 = smov %s915_s5  ;;  %s1094_s15 = smov %s786_s16 }
  0x6a   : > { %s1095_s16 = smov %s1097_s9  ;;  %20 = sbr.rel (!%p18_p6) target bundleno = 10 (0xa), region = 97 }
  0x6f   :  { %409 = vsyncpa [#allocation3], 1 }
  0x70   :  { %411 = vsyncpa [#allocation3 + $0x1], 1 }
  0x71   :  { %412 = vsyncpa [#allocation4], 1 }
  0x72   :  { %414 = vsyncpa [#allocation4 + $0x1], 1 }
  0x73   :  { %415 = vsyncpa [#allocation5], 1 }
  0x74   :  { %417 = vsyncpa [#allocation5 + $0x1], 1 }
  0x75   :  { %418 = vsyncpa [#allocation6], 1 }
  0x76   :  { %420 = vsyncpa [#allocation6 + $0x1], 1 }

</bundles_post_ra>
